<compile_context>
chip_gen: v7x
topology: tpu7x:2x2x1
jax: 0.10.0
libtpu: 0.0.40
codegen_flags: <defaults>
</compile_context>

<pallas_src>
import functools

import jax
import jax.numpy as jnp
from jax import lax
from jax.experimental import pallas as pl
from jax.experimental.pallas import tpu as pltpu

GAMMA = 2.5
ALPHA = 1.0
SIZE_AVERAGE = True


def _round_up(x, m):
    return ((x + m - 1) // m) * m


def _choose_tile_n(n, c, itemsize):
    # ~6 MiB per logits buffer; BlockSpec double-buffers => ~12 MiB total,
    # safe for v5e's 16 MiB scoped default and v7x's 64 MiB physical VMEM.
    budget = 6 * 1024 * 1024
    max_rows = max(8, budget // max(1, c * itemsize))
    tile = min(512, int(max_rows), _round_up(n, 8))
    return max(8, (tile // 8) * 8)


def _focal_loss_kernel(logits_ref, labels_ref, out_ref, acc_ref, *, gamma,
                       alpha, n_valid, tiles_per_split, tile_n):
    split = pl.program_id(0)      # "parallel" axis (per-TensorCore row split)
    step = pl.program_id(1)       # "arbitrary" reduction axis over row tiles

    @pl.when(step == 0)
    def _init():
        acc_ref[...] = jnp.zeros_like(acc_ref)

    x = logits_ref[...].astype(jnp.float32)           # [T, C]
    t, c = x.shape

    # Row-validity mask: rows past the true N (grid padding) contribute 0.
    row0 = (split * tiles_per_split + step) * tile_n
    rows = row0 + lax.broadcasted_iota(jnp.int32, (t, 1), 0)
    valid = rows < n_valid                            # [T, 1] bool
    x = jnp.where(valid, x, 0.0)                      # keep padded rows finite

    # Numerically stable log_softmax along the class (lane) axis.
    m = jnp.max(x, axis=-1, keepdims=True)
    s = x - m
    lse = jnp.log(jnp.sum(jnp.exp(s), axis=-1, keepdims=True))
    log_p = s - lse                                   # [T, C]

    # One-hot(labels) via iota compare (scatter-free); per-row target log-prob.
    col = lax.broadcasted_iota(jnp.int32, (t, c), 1)
    onehot = col == labels_ref[...]                   # [T, C] bool
    log_p_t = jnp.sum(jnp.where(onehot, log_p, 0.0), axis=-1, keepdims=True)

    # fl == -alpha*log_p for every non-target element (sub_pt == 1 there), so
    #   sum(fl) = -alpha * [ sum(log_p) + ((1-log_p_t)^gamma - 1)*log_p_t ].
    row_sum = jnp.sum(log_p, axis=-1, keepdims=True)  # [T, 1]
    row_sum = jnp.where(valid, row_sum, 0.0)

    u = 1.0 - log_p_t                                 # >= 1 on valid rows
    if gamma == 2.5:
        pow_u = u * u * jnp.sqrt(u)                   # u**2.5, one EUP op
    else:
        pow_u = jnp.power(u, gamma)
    corr = (pow_u - 1.0) * log_p_t
    corr = jnp.where(valid, corr, 0.0)

    partial = -alpha * (jnp.sum(row_sum) + jnp.sum(corr))
    acc_ref[...] += partial

    @pl.when(step == tiles_per_split - 1)
    def _finalize():
        # Lane-dense (1, 8, 128) output block -> unmasked stores; the wrapper
        # reads element [split, 0, 0].
        out_ref[...] = jnp.broadcast_to(acc_ref[...], (1, 8, 128))


def focal_loss(logits, labels, *, gamma=GAMMA, alpha=ALPHA,
               size_average=SIZE_AVERAGE, tile_n=None):
    """logits: [N, C] float (any float dtype), labels: [N] int -> scalar."""
    n, c = logits.shape
    itemsize = jnp.dtype(logits.dtype).itemsize
    if tile_n is None:
        tile_n = _choose_tile_n(n, c, itemsize)
    tile_n = max(8, (int(tile_n) // 8) * 8)

    total_tiles = pl.cdiv(n, tile_n)
    num_splits = 2 if total_tiles >= 2 else 1          # one split per v7x TC
    tiles_per_split = pl.cdiv(total_tiles, num_splits)
    n_pad = num_splits * tiles_per_split * tile_n

    labels_i32 = labels.astype(jnp.int32)
    if n_pad != n:
        logits_p = jnp.pad(logits, ((0, n_pad - n), (0, 0)))
        labels_i32 = jnp.pad(labels_i32, ((0, n_pad - n),))
    else:
        logits_p = logits
    labels2d = labels_i32.reshape(n_pad, 1)

    kernel = functools.partial(
        _focal_loss_kernel, gamma=float(gamma), alpha=float(alpha),
        n_valid=n, tiles_per_split=tiles_per_split, tile_n=tile_n)

    out = pl.pallas_call(
        kernel,
        out_shape=jax.ShapeDtypeStruct((num_splits, 8, 128), jnp.float32),
        grid_spec=pltpu.PrefetchScalarGridSpec(
            num_scalar_prefetch=0,
            grid=(num_splits, tiles_per_split),
            in_specs=[
                pl.BlockSpec((tile_n, c),
                             lambda s, i: (s * tiles_per_split + i, 0)),
                pl.BlockSpec((tile_n, 1),
                             lambda s, i: (s * tiles_per_split + i, 0)),
            ],
            out_specs=pl.BlockSpec((1, 8, 128), lambda s, i: (s, 0, 0)),
            scratch_shapes=[pltpu.VMEM((1, 1), jnp.float32)],
        ),
        compiler_params=pltpu.CompilerParams(
            dimension_semantics=("parallel", "arbitrary")),
        cost_estimate=pl.CostEstimate(
            flops=8 * n * c,
            transcendentals=n * c + 2 * n,
            bytes_accessed=n * c * itemsize + n * 4 + num_splits * 4),
    )(logits_p, labels2d)

    total = jnp.sum(out[:, 0, 0])
    if size_average:
        total = total / jnp.float32(n * c)
    return total


def _focal_loss_ref(logits, labels, *, gamma=GAMMA, alpha=ALPHA,
                    size_average=SIZE_AVERAGE):
    logits = logits.astype(jnp.float32)
    log_p = jax.nn.log_softmax(logits, axis=-1)
    onehot = jax.nn.one_hot(labels, logits.shape[-1], dtype=jnp.float32)
    pt = onehot * log_p
    sub_pt = 1.0 - pt
    fl = -alpha * jnp.power(sub_pt, gamma) * log_p
    return fl.mean() if size_average else fl.sum()


if __name__ == "__main__":
    # batch=2, seq=8 -> N = 16 flattened positions; labels_length C = 16.
    N, C = 16, 16
    key = jax.random.PRNGKey(0)
    k1, k2 = jax.random.split(key)
    logits = jax.random.normal(k1, (N, C), dtype=jnp.float32)
    labels = jax.random.randint(k2, (N,), 0, C, dtype=jnp.int32)

    loss = jax.block_until_ready(focal_loss(logits, labels))
    ref = jax.block_until_ready(_focal_loss_ref(logits, labels))
    assert jnp.allclose(loss, ref, rtol=1e-5, atol=1e-5), (loss, ref)

    # Exercise the multi-tile / two-split / row-padding (masking) path.
    N2, C2 = 24, 16
    k3, k4 = jax.random.split(k2)
    logits2 = jax.random.normal(k3, (N2, C2), dtype=jnp.float32)
    labels2 = jax.random.randint(k4, (N2,), 0, C2, dtype=jnp.int32)
    loss2 = jax.block_until_ready(focal_loss(logits2, labels2, tile_n=8))
    ref2 = jax.block_until_ready(_focal_loss_ref(logits2, labels2))
    assert jnp.allclose(loss2, ref2, rtol=1e-5, atol=1e-5), (loss2, ref2)

    print("KERNEL_OK")
</pallas_src>

<mosaic_0001>
module attributes {stable_mosaic.version = 11 : i64} {
  func.func @_focal_loss_kernel(%arg0: i32, %arg1: i32, %arg2: memref<16x16xf32, #tpu.memory_space<vmem>>, %arg3: memref<16x1xi32, #tpu.memory_space<vmem>>, %arg4: memref<1x8x128xf32, #tpu.memory_space<vmem>>, %arg5: memref<1x1xf32, #tpu.memory_space<vmem>>) attributes {dimension_semantics = [#tpu.dimension_semantics<parallel>, #tpu.dimension_semantics<arbitrary>], iteration_bounds = array<i64: 1, 1>, scalar_prefetch = 0 : i64, scratch_operands = 1 : i64, tpu.core_type = #tpu.core_type<tc>, window_params = [{transform_indices = @transform_0, window_bounds = array<i64: 16, 16>}, {transform_indices = @transform_1, window_bounds = array<i64: 16, 1>}, {transform_indices = @transform_2, window_bounds = array<i64: 1, 8, 128>}]} {
    %c0_i32 = arith.constant 0 : i32
    %0 = arith.cmpi eq, %arg1, %c0_i32 : i32
    %1 = arith.extui %0 : i1 to i32
    %c0_i32_0 = arith.constant 0 : i32
    %2 = arith.cmpi ne, %1, %c0_i32_0 : i32
    scf.if %2 {
      %cst_23 = arith.constant 0.000000e+00 : f32
      %65 = vector.broadcast %cst_23 : f32 to vector<1x1xf32>
      %c0_24 = arith.constant 0 : index
      %c0_25 = arith.constant 0 : index
      %66 = vector.load %arg5[%c0_24, %c0_25] : memref<1x1xf32, #tpu.memory_space<vmem>>, vector<1x1xf32>
      tpu.vector_store %arg5[%c0_24, %c0_25], %65 {strides = array<i32>} : memref<1x1xf32, #tpu.memory_space<vmem>>, vector<1x1xf32>,
    } else {
    }
    %c0 = arith.constant 0 : index
    %c0_1 = arith.constant 0 : index
    %3 = vector.load %arg2[%c0, %c0_1] : memref<16x16xf32, #tpu.memory_space<vmem>>, vector<16x16xf32>
    %c1_i32 = arith.constant 1 : i32
    %4 = arith.muli %arg0, %c1_i32 : i32
    %5 = arith.addi %4, %arg1 : i32
    %c16_i32 = arith.constant 16 : i32
    %6 = arith.muli %5, %c16_i32 : i32
    %7 = tpu.iota {dimensions = array<i32: 0>} : vector<16x1xi32>
    %8 = vector.broadcast %6 : i32 to vector<16x1xi32>
    %9 = arith.addi %8, %7 : vector<16x1xi32>
    %c16_i32_2 = arith.constant 16 : i32
    %10 = vector.broadcast %c16_i32_2 : i32 to vector<16x1xi32>
    %11 = arith.cmpi slt, %9, %10 : vector<16x1xi32>
    %cst = arith.constant 0.000000e+00 : f32
    %12 = vector.shape_cast %11 : vector<16x1xi1> to vector<16x1xi1>
    %13 = vector.broadcast %12 : vector<16x1xi1> to vector<16x16xi1>
    %14 = vector.broadcast %cst : f32 to vector<16x16xf32>
    %15 = arith.select %13, %3, %14 : vector<16x16xi1>, vector<16x16xf32>
    %cst_3 = arith.constant dense<0xFF800000> : vector<16xf32>
    %16 = vector.multi_reduction <maximumf>, %15, %cst_3 [1] : vector<16x16xf32> to vector<16xf32>
    %17 = vector.shape_cast %16 : vector<16xf32> to vector<16x1xf32>
    %18 = vector.broadcast %17 : vector<16x1xf32> to vector<16x16xf32>
    %19 = arith.subf %15, %18 : vector<16x16xf32>
    %20 = math.exp %19 : vector<16x16xf32>
    %cst_4 = arith.constant dense<0.000000e+00> : vector<16xf32>
    %21 = vector.multi_reduction <add>, %20, %cst_4 [1] : vector<16x16xf32> to vector<16xf32>
    %22 = vector.shape_cast %21 : vector<16xf32> to vector<16x1xf32>
    %23 = math.log %22 : vector<16x1xf32>
    %24 = vector.broadcast %23 : vector<16x1xf32> to vector<16x16xf32>
    %25 = arith.subf %19, %24 : vector<16x16xf32>
    %26 = tpu.iota {dimensions = array<i32: 1>} : vector<16x16xi32>
    %c0_5 = arith.constant 0 : index
    %c0_6 = arith.constant 0 : index
    %27 = vector.load %arg3[%c0_5, %c0_6] : memref<16x1xi32, #tpu.memory_space<vmem>>, vector<16x1xi32>
    %28 = vector.broadcast %27 : vector<16x1xi32> to vector<16x16xi32>
    %29 = arith.cmpi eq, %26, %28 : vector<16x16xi32>
    %cst_7 = arith.constant 0.000000e+00 : f32
    %30 = vector.broadcast %cst_7 : f32 to vector<16x16xf32>
    %31 = arith.select %29, %25, %30 : vector<16x16xi1>, vector<16x16xf32>
    %cst_8 = arith.constant dense<0.000000e+00> : vector<16xf32>
    %32 = vector.multi_reduction <add>, %31, %cst_8 [1] : vector<16x16xf32> to vector<16xf32>
    %33 = vector.shape_cast %32 : vector<16xf32> to vector<16x1xf32>
    %cst_9 = arith.constant dense<0.000000e+00> : vector<16xf32>
    %34 = vector.multi_reduction <add>, %25, %cst_9 [1] : vector<16x16xf32> to vector<16xf32>
    %35 = vector.shape_cast %34 : vector<16xf32> to vector<16x1xf32>
    %cst_10 = arith.constant 0.000000e+00 : f32
    %36 = vector.broadcast %cst_10 : f32 to vector<16x1xf32>
    %37 = arith.select %11, %35, %36 : vector<16x1xi1>, vector<16x1xf32>
    %cst_11 = arith.constant 1.000000e+00 : f32
    %38 = vector.broadcast %cst_11 : f32 to vector<16x1xf32>
    %39 = arith.subf %38, %33 : vector<16x1xf32>
    %40 = arith.mulf %39, %39 : vector<16x1xf32>
    %41 = math.sqrt %39 : vector<16x1xf32>
    %42 = arith.mulf %40, %41 : vector<16x1xf32>
    %cst_12 = arith.constant 1.000000e+00 : f32
    %43 = vector.broadcast %cst_12 : f32 to vector<16x1xf32>
    %44 = arith.subf %42, %43 : vector<16x1xf32>
    %45 = arith.mulf %44, %33 : vector<16x1xf32>
    %cst_13 = arith.constant 0.000000e+00 : f32
    %46 = vector.broadcast %cst_13 : f32 to vector<16x1xf32>
    %47 = arith.select %11, %45, %46 : vector<16x1xi1>, vector<16x1xf32>
    %48 = vector.shape_cast %37 : vector<16x1xf32> to vector<1x16x1xf32>
    %cst_14 = arith.constant dense<0.000000e+00> : vector<1xf32>
    %49 = vector.multi_reduction <add>, %48, %cst_14 [1, 2] : vector<1x16x1xf32> to vector<1xf32>
    %50 = vector.shape_cast %49 : vector<1xf32> to vector<1x1x1xf32>
    %51 = vector.extract %50[0, 0, 0] : f32 from vector<1x1x1xf32>
    %52 = vector.shape_cast %47 : vector<16x1xf32> to vector<1x16x1xf32>
    %cst_15 = arith.constant dense<0.000000e+00> : vector<1xf32>
    %53 = vector.multi_reduction <add>, %52, %cst_15 [1, 2] : vector<1x16x1xf32> to vector<1xf32>
    %54 = vector.shape_cast %53 : vector<1xf32> to vector<1x1x1xf32>
    %55 = vector.extract %54[0, 0, 0] : f32 from vector<1x1x1xf32>
    %56 = arith.addf %51, %55 : f32
    %cst_16 = arith.constant -1.000000e+00 : f32
    %57 = arith.mulf %cst_16, %56 : f32
    %c0_17 = arith.constant 0 : index
    %c0_18 = arith.constant 0 : index
    %58 = vector.load %arg5[%c0_17, %c0_18] : memref<1x1xf32, #tpu.memory_space<vmem>>, vector<1x1xf32>
    %59 = vector.broadcast %57 : f32 to vector<1x1xf32>
    %60 = arith.addf %58, %59 : vector<1x1xf32>
    %c0_19 = arith.constant 0 : index
    %c0_20 = arith.constant 0 : index
    %61 = vector.load %arg5[%c0_19, %c0_20] : memref<1x1xf32, #tpu.memory_space<vmem>>, vector<1x1xf32>
    tpu.vector_store %arg5[%c0_19, %c0_20], %60 {strides = array<i32>} : memref<1x1xf32, #tpu.memory_space<vmem>>, vector<1x1xf32>,
    %c0_i32_21 = arith.constant 0 : i32
    %62 = arith.cmpi eq, %arg1, %c0_i32_21 : i32
    %63 = arith.extui %62 : i1 to i32
    %c0_i32_22 = arith.constant 0 : i32
    %64 = arith.cmpi ne, %63, %c0_i32_22 : i32
    scf.if %64 {
      %c0_23 = arith.constant 0 : index
      %c0_24 = arith.constant 0 : index
      %65 = vector.load %arg5[%c0_23, %c0_24] : memref<1x1xf32, #tpu.memory_space<vmem>>, vector<1x1xf32>
      %66 = vector.shape_cast %65 : vector<1x1xf32> to vector<1x1x1xf32>
      %67 = vector.broadcast %66 : vector<1x1x1xf32> to vector<1x8x128xf32>
      %c0_25 = arith.constant 0 : index
      %c0_26 = arith.constant 0 : index
      %c0_27 = arith.constant 0 : index
      %68 = vector.load %arg4[%c0_25, %c0_26, %c0_27] : memref<1x8x128xf32, #tpu.memory_space<vmem>>, vector<1x8x128xf32>
      tpu.vector_store %arg4[%c0_25, %c0_26, %c0_27], %67 {strides = array<i32>} : memref<1x8x128xf32, #tpu.memory_space<vmem>>, vector<1x8x128xf32>,
    } else {
    }
    return
  }
  func.func @transform_0(%arg0: i32, %arg1: i32) -> (i32, i32) {
    %c1_i32 = arith.constant 1 : i32
    %0 = arith.muli %arg0, %c1_i32 : i32
    %1 = arith.addi %0, %arg1 : i32
    %c0_i32 = arith.constant 0 : i32
    %c0_i32_0 = arith.constant 0 : i32
    return %1, %c0_i32 : i32, i32
  }
  func.func @transform_1(%arg0: i32, %arg1: i32) -> (i32, i32) {
    %c1_i32 = arith.constant 1 : i32
    %0 = arith.muli %arg0, %c1_i32 : i32
    %1 = arith.addi %0, %arg1 : i32
    %c0_i32 = arith.constant 0 : i32
    %c0_i32_0 = arith.constant 0 : i32
    return %1, %c0_i32 : i32, i32
  }
  func.func @transform_2(%arg0: i32, %arg1: i32) -> (i32, i32, i32) {
    %c0_i32 = arith.constant 0 : i32
    %c0_i32_0 = arith.constant 0 : i32
    %c0_i32_1 = arith.constant 0 : i32
    return %arg0, %c0_i32, %c0_i32_0 : i32, i32, i32
  }
}

</mosaic_0001>

<bundles_post_ra>
// kernel: tpu_custom_call.1
= control target key start
LH: loop header
LB: loop body
LE: loop exit
PB: predicated region body
PF: predicated region fallthrough
CT: control target
= control target key end

     0   :  { %vm80_vm0 = vcmask 130048   ;;  %s335_s0 = inlined_call_operand.vmem [shape: f32[16,16], index: 0, kind: input, shape index: {}]   ;;  %s336_s1 = inlined_call_operand.vmem [shape: s32[16,1], index: 1, kind: input, shape index: {}]   ;;  %s337_s2 = inlined_call_operand.hbm [shape: f32[1,8,128], index: 2, kind: output, shape index: {}]  }
   0x1   :  { %v62_v0 = vld [vmem:[%s335_s0] sm:$0xff]  ;;  %v63_v1 = vld [vmem:[%s335_s0 + $0x8] sm:$0xff] }
   0x2   :  { %7 = vsyncpa [#allocation4], 0  ;;  %v81_v2 = vsel %vm80_vm0, %v62_v0, -inf  ;;  %v84_v3 = vsel %vm80_vm0, %v63_v1, -inf  ;;  %v107_v4 = vld [vmem:[%s336_s1] sm:$0xff]  ;;  %v279_v5 = vmov 0   ;;  %v105_v19 = vlaneseq }
   0x3   :  { %82 = vmax.xlane.f32.xlu0 %v81_v2  ;;  %242 = vset.pattern.permute.xlu1 %v279_v5  ;;  %v108_v16 = vld [vmem:[%s336_s1 + $0x8] sm:$0xff]  ;;  %vm159_vm3 = vcmask 7168   ;;  %vm60_vm8 = vcmask 0   ;;  %s281_s19 = smov [#allocation3]  }
   0x4   :  { %241 = vset.pattern.permute.xlu0 %v279_v5  ;;  %v106_v20 = vand.u32 127, %v105_v19  ;;  %s211_s20 = sshll.u32 %s281_s19, 4  ;;  %s212_s20 = int_to_ptr.vmem [resolvable:$true] %s211_s20 }
   0x5   :  { %s255_s21 = scalar_lea.vmem %s212_s20, 128  ;;  %p260_p1 = scmp.lt.s32.totalorder %s212_s20, %s212_s20 }
   0x6   :  { %p256_p0 = scmp.ne.s32.totalorder %s212_s20, %s255_s21  ;;  %p261_p2 = scmp.lt.s32.totalorder %s255_s21, %s255_s21 }
   0x7   :  { %85 = vmax.xlane.f32.xlu0 %v84_v3 }
   0x8   :  { %p262_p3 = por %p261_p2, %p260_p1 }
   0xa   :  { %p263_p4 = pnand %p262_p3, %p256_p0 }
  0x1d   :  { %110 = vperm.xlu0 %241, %v107_v4  }
  0x90   :  { %v83_v6 = vpop.xlane.xlu0 %82 }
  0x91   :  { %v87_v7 = vsub.f32 %v62_v0, %v83_v6 }
  0x93   :  { %v89_v8 = vmul.f32 1.442695, %v87_v7 }
  0x94   :  { %v86_v9 = vpop.xlane.xlu0 %85 }
  0x95   :  { %243 = vpow2.f32 %v89_v8  ;;  %v88_v10 = vsub.f32 %v63_v1, %v86_v9  ;;  %v280_v1 = vmov 0.0  }
  0x96   :  { %61 = vst.msk [vmem:[#allocation2] sm:$0x1] %vm60_vm8, %v280_v1 }
  0x97   :  { %v91_v11 = vmul.f32 1.442695, %v88_v10 }
  0x99   :  { %245 = vpow2.f32 %v91_v11 }
  0x9c   :  { %v111_v21 = vpop.permute.xlu0 %110 }
  0x9d   :  { %vm115_vm1 = vcmp.eq.s32.totalorder %v106_v20, %v111_v21 }
  0x9f   :  { %v244_v12 = vpop.eup %243 }
  0xa0   :  { %v93_v13 = vsel %vm80_vm0, %v244_v12, 0.0 }
  0xa1   :  { %94 = vadd.xlane.f32.xlu1 %v93_v13 }
  0xa3   :  { %v246_v14 = vpop.eup %245 }
  0xa4   :  { %v96_v15 = vsel %vm80_vm0, %v246_v14, 0.0 }
  0xa5   :  { %97 = vadd.xlane.f32.xlu1 %v96_v15 }
  0xb6   :  { %113 = vperm.xlu1 %242, %v108_v16   ;;  %v186_v16 = vld [vmem:[#allocation2] sm:$0x1] }
 0x12e   :  { %v95_v17 = vpop.xlane.xlu1 %94 }
 0x12f   :  { %247 = vlog2.f32 %v95_v17 }
 0x132   :  { %v98_v18 = vpop.xlane.xlu1 %97 }
 0x133   :  { %249 = vlog2.f32 %v98_v18 }
 0x136   :  { %v114_v24 = vpop.permute.xlu1 %113 }
 0x137   :  { %vm116_vm2 = vcmp.eq.s32.totalorder %v106_v20, %v114_v24 }
 0x139   :  { %v248_v22 = vpop.eup %247 }
 0x13a   :  { %v100_v23 = vmul.f32 0.6931472, %v248_v22 }
 0x13c   :  { %v103_v25 = vsub.f32 %v87_v7, %v100_v23 }
 0x13d   :  { %v250_v26 = vpop.eup %249 }
 0x13e   :  { %v102_v27 = vmul.f32 0.6931472, %v250_v26  ;;  %v117_v28 = vsel %vm115_vm1, %v103_v25, 0.0  ;;  %v125_v33 = vsel %vm80_vm0, %v103_v25, 0.0 }
 0x13f   :  { %v119_v29 = vsel %vm80_vm0, %v117_v28, 0.0 }
 0x140   :  { %120 = vadd.xlane.f32.xlu1 %v119_v29  ;;  %v104_v30 = vsub.f32 %v88_v10, %v102_v27 }
 0x142   :  { %v118_v31 = vsel %vm116_vm2, %v104_v30, 0.0  ;;  %v128_v34 = vsel %vm80_vm0, %v104_v30, 0.0 }
 0x143   :  { %v122_v32 = vsel %vm80_vm0, %v118_v31, 0.0 }
 0x144   :  { %123 = vadd.xlane.f32.xlu0 %v122_v32  ;;  %126 = vadd.xlane.f32.xlu1 %v125_v33 }
 0x148   :  { %129 = vadd.xlane.f32.xlu1 %v128_v34 }
 0x1cd   :  { %v121_v35 = vpop.xlane.xlu1 %120 }
 0x1ce   :  { %v133_v36 = vsub.f32 1.0, %v121_v35 }
 0x1d0   :  { %251 = vrsqrt.f32 %v133_v36  ;;  %vm139_vm4 = vcmp.eq.f32.partialorder %v133_v36, inf  ;;  %v142_v46 = vand.u32 2147483648, %v133_v36  ;;  %v135_v47 = vmul.f32 %v133_v36, %v133_v36 }
 0x1d1   :  { %v127_v37 = vpop.xlane.xlu1 %126  ;;  %v124_v38 = vpop.xlane.xlu0 %123  ;;  %vm141_vm5 = vcmp.eq.f32.partialorder %v133_v36, 0.0 }
 0x1d2   :  { %v134_v39 = vsub.f32 1.0, %v124_v38  ;;  %v160_v41 = vsel %vm159_vm3, %v127_v37, 0.0 }
 0x1d4   :  { %253 = vrsqrt.f32 %v134_v39  ;;  %vm146_vm6 = vcmp.eq.f32.partialorder %v134_v39, inf  ;;  %v149_v53 = vand.u32 2147483648, %v134_v39  ;;  %v136_v55 = vmul.f32 %v134_v39, %v134_v39 }
 0x1d5   :  { %v130_v40 = vpop.xlane.xlu1 %129  ;;  %vm148_vm7 = vcmp.eq.f32.partialorder %v134_v39, 0.0 }
 0x1d6   :  { %v161_v42 = vsel %vm159_vm3, %v130_v40, 0.0 }
 0x1d7   :  { %v162_v43 = vadd.f32 %v161_v42, %v160_v41 }
 0x1d9   :  { %163 = vadd.xlane.f32.xlu1 %v162_v43 }
 0x1da   :  { %v252_v44 = vpop.eup %251 }
 0x1db   :  { %v138_v45 = vmul.f32 %v252_v44, %v133_v36 }
 0x1dd   :  { %v140_v48 = vsel %vm139_vm4, %v133_v36, %v138_v45 }
 0x1de   :  { %v254_v49 = vpop.eup %253  ;;  %v143_v50 = vsel %vm141_vm5, %v142_v46, %v140_v48 }
 0x1df   :  { %v151_v51 = vmul.f32 %v143_v50, %v135_v47  ;;  %v145_v52 = vmul.f32 %v254_v49, %v134_v39 }
 0x1e1   :  { %v231_v54 = vadd.f32 -1.0, %v151_v51  ;;  %v147_v56 = vsel %vm146_vm6, %v134_v39, %v145_v52 }
 0x1e2   :  { %v150_v57 = vsel %vm148_vm7, %v149_v53, %v147_v56 }
 0x1e3   :  { %v152_v58 = vmul.f32 %v150_v57, %v136_v55  ;;  %v155_v59 = vmul.f32 %v231_v54, %v121_v35 }
 0x1e5   :  { %v232_v60 = vadd.f32 -1.0, %v152_v58  ;;  %v172_v62 = vsel %vm159_vm3, %v155_v59, 0.0 }
 0x1e7   :  { %v156_v61 = vmul.f32 %v232_v60, %v124_v38 }
 0x1e9   :  { %v173_v63 = vsel %vm159_vm3, %v156_v61, 0.0 }
 0x1ea   :  { %v174_v0 = vadd.f32 %v173_v63, %v172_v62 }
 0x1ec   :  { %175 = vadd.xlane.f32.xlu1 %v174_v0 }
 0x266   :  { %v164_v2 = vpop.xlane.xlu1 %163 }
 0x267   :  { %v165_v3 = vrot.slane %v164_v2, 4 }
 0x269   :  { %v166_v4 = vadd.f32 %v165_v3, %v164_v2 }
 0x26b   :  { %v167_v5 = vrot.slane %v166_v4, 2 }
 0x26d   :  { %v168_v6 = vadd.f32 %v167_v5, %v166_v4 }
 0x26f   :  { %v169_v7 = vrot.slane %v168_v6, 1 }
 0x271   :  { %v170_v8 = vadd.f32 %v169_v7, %v168_v6 }
 0x273   :  { %234 = vpush %v170_v8 }
 0x279   :  { %v176_v9 = vpop.xlane.xlu1 %175 }
 0x27a   :  { %v177_v10 = vrot.slane %v176_v9, 4 }
 0x27c   :  { %v178_v11 = vadd.f32 %v177_v10, %v176_v9 }
 0x27e   :  { %v179_v12 = vrot.slane %v178_v11, 2 }
 0x280   :  { %v180_v13 = vadd.f32 %v179_v12, %v178_v11 }
 0x282   :  { %v181_v14 = vrot.slane %v180_v13, 1 }
 0x284   :  { %v182_v15 = vadd.f32 %v181_v14, %v180_v13 }
 0x286   :  { %236 = vpush %v182_v15 }
 0x2a4   :  { %s235_s1 = spop %234 }
 0x2b7   :  { %s237_s16 = spop %236 }
 0x2b8   :  { %s184_s17 = sadd.f32 %s237_s16, %s235_s1 }
 0x2ba   :  { %s185_s18 = smul.f32 -1.0, %s184_s17 }
 0x2bc   :  { %v187_v17 = vstv %s185_s18 }
 0x2bd   :  { %v188_v18 = vadd.f32 %v187_v17, %v186_v16 }
 0x2bf   :  { %190 = vst.msk [vmem:[#allocation2] sm:$0x1] %vm60_vm8, %v188_v18 }
 0x2c6   :  { %v233_v19 = vld [vmem:[#allocation2] ss:$0 sm:$0xff] }
 0x2c7   :  { %201 = vperm.xlu1 %242, %v233_v19  }
 0x346   :  { %v202_v20 = vpop.permute.xlu1 %201 }
 0x347   :  { %204 = vst [vmem:[#allocation3] sm:$0xff] %v202_v20 }
 0x348   :  { %266 = shalt.err (!%p263_p4)
}
 0x349   :  { %s267_s24 = scalar_lea.hbm %s337_s2, 128 }
 0x34a   :  { %p268_p5 = scmp.ne.s32.totalorder %s337_s2, %s267_s24  ;;  %p271_p6 = scmp.lt.u32.totalorder %s267_s24, %s337_s2 }
 0x34c   :  { %p273_p7 = pnand %p271_p6, %p268_p5 }
 0x34e   :  { %276 = shalt.err (!%p273_p7)
}
 0x34f   :  { %214 = dma.vmem_to_hbm [thread:$0]  %s212_s20, 128, %s337_s2, [#allocation4]  }
 0x350   :  { %277 = dma.done.wait [#allocation4], 128  }
 0x351   :  { %278 = vsyncadd [#allocation4], 4294967168 }
 0x352   :  { %218 = vsyncpa [#allocation4], 1 }

</bundles_post_ra>
